<compile_context>
chip_gen: v6e
topology: v6e:2x2x1
jax: 0.10.0
libtpu: 0.0.40
codegen_flags: <defaults>
</compile_context>

<pallas_src>
import jax
import jax.numpy as jnp
from jax.experimental import pallas as pl
from jax.experimental.pallas import tpu as pltpu


# ------------------------------ Pallas kernel -------------------------------

def _unembed_kernel(x_ref, o_ref):
    # x_ref block: (1, L, C)   o_ref block: (1, C, L)
    o_ref[0] = x_ref[0].T          # (L, C) -> (C, L), pure layout move (XLU)


# ------------------------------ wrapper --------------------------------------

def patch_unembed(x, x_size):
    """PatchUnEmbed.forward: x (B, H*W, C), x_size=(H, W) -> (B, C, H, W)."""
    b, L, c = x.shape
    h, w = x_size
    assert L == h * w, "token count must equal H*W"

    out = pl.pallas_call(
        _unembed_kernel,
        out_shape=jax.ShapeDtypeStruct((b, c, L), x.dtype),
        grid=(b,),
        in_specs=[pl.BlockSpec((1, L, c), lambda i: (i, 0, 0))],
        out_specs=pl.BlockSpec((1, c, L), lambda i: (i, 0, 0)),
        compiler_params=pltpu.CompilerParams(
            dimension_semantics=("parallel",)),   # shard batch across TCs (v7x)
    )(x)

    # (B, C, L) -> (B, C, H, W): collapsing/splitting trailing contiguous dims
    # is a metadata-only reshape (matches torch .contiguous().view(...)).
    return out.reshape(b, c, h, w)


# ------------------------------ main ------------------------------------------

if __name__ == "__main__":
    b = 2
    h = w = 16
    embed_dim = 32

    x = jax.random.normal(jax.random.PRNGKey(0), (b, h * w, embed_dim), jnp.float32)

    out = jax.block_until_ready(patch_unembed(x, (h, w)))
    assert out.shape == (b, embed_dim, h, w)

    # reference: exact same data movement done by XLA
    ref = jnp.transpose(x, (0, 2, 1)).reshape(b, embed_dim, h, w)
    assert bool(jnp.array_equal(out, ref)), "mismatch vs reference"

    print("KERNEL_OK")
</pallas_src>

<mosaic_0001>
module attributes {stable_mosaic.version = 11 : i64} {
  func.func @_unembed_kernel(%arg0: i32, %arg1: memref<1x256x32xf32, #tpu.memory_space<vmem>>, %arg2: memref<1x32x256xf32, #tpu.memory_space<vmem>>) attributes {dimension_semantics = [#tpu.dimension_semantics<parallel>], iteration_bounds = array<i64: 2>, scalar_prefetch = 0 : i64, scratch_operands = 0 : i64, tpu.core_type = #tpu.core_type<tc>, window_params = [{transform_indices = @transform_0, window_bounds = array<i64: 1, 256, 32>}, {transform_indices = @transform_1, window_bounds = array<i64: 1, 32, 256>}]} {
    %c0 = arith.constant 0 : index
    %c0_0 = arith.constant 0 : index
    %c0_1 = arith.constant 0 : index
    %0 = vector.load %arg1[%c0, %c0_0, %c0_1] : memref<1x256x32xf32, #tpu.memory_space<vmem>>, vector<1x256x32xf32>
    %1 = vector.shape_cast %0 : vector<1x256x32xf32> to vector<256x32xf32>
    %2 = tpu.transpose %1, [1, 0] : vector<256x32xf32> -> vector<32x256xf32>
    %c0_2 = arith.constant 0 : index
    %c0_3 = arith.constant 0 : index
    %c0_4 = arith.constant 0 : index
    %3 = vector.load %arg2[%c0_2, %c0_3, %c0_4] : memref<1x32x256xf32, #tpu.memory_space<vmem>>, vector<1x32x256xf32>
    %4 = vector.shape_cast %3 : vector<1x32x256xf32> to vector<32x256xf32>
    %5 = vector.shape_cast %2 : vector<32x256xf32> to vector<1x32x256xf32>
    tpu.vector_store %arg2[%c0_2, %c0_3, %c0_4], %5 {strides = array<i32>} : memref<1x32x256xf32, #tpu.memory_space<vmem>>, vector<1x32x256xf32>,
    return
  }
  func.func @transform_0(%arg0: i32) -> (i32, i32, i32) {
    %c0_i32 = arith.constant 0 : i32
    %c0_i32_0 = arith.constant 0 : i32
    %c0_i32_1 = arith.constant 0 : i32
    return %arg0, %c0_i32, %c0_i32_0 : i32, i32, i32
  }
  func.func @transform_1(%arg0: i32) -> (i32, i32, i32) {
    %c0_i32 = arith.constant 0 : i32
    %c0_i32_0 = arith.constant 0 : i32
    %c0_i32_1 = arith.constant 0 : i32
    return %arg0, %c0_i32, %c0_i32_0 : i32, i32, i32
  }
}

</mosaic_0001>

<bundles_post_ra>
// kernel: tpu_custom_call.1
= control target key start
LH: loop header
LB: loop body
LE: loop exit
PB: predicated region body
PF: predicated region fallthrough
CT: control target
= control target key end

     0   :  { %6 = vsyncpa [#allocation3], 0  ;;  %s561_s0 = inlined_call_operand.vmem [shape: f32[2,256,32], index: 0, kind: input, shape index: {}]   ;;  %s562_s1 = inlined_call_operand.hbm [shape: f32[2,32,256], index: 1, kind: output, shape index: {}]  }
   0x1   :  { %8 = vsyncpa [#allocation3 + $0x1], 0  ;;  %s425_s6 = smov 0   ;;  %s427_s7 = smov 0  }
   0x2   :  { %s429_s8 = smov 0   ;;  %s431_s9 = smov 0  }
   0x3 LB: > { %s446_s10 = sadd.s32 4294967295, %s410_s9   ;;  %s295_s11 = sadd.s32 4294967294, %s410_s9   ;;  %s410_s9 = sphi %s431_s9, %s568_s9   ;;  %s406_s8 = sphi %s429_s8, %s567_s8   ;;  %s402_s7 = sphi %s427_s7, %s566_s7   ;;  %s398_s6 = sphi %s425_s6, %s565_s6  }
   0x4   : > { %s450_s12 = sadd.s32 1, %s410_s9   ;;  %s47_s13 = sadd.s32 1, %s406_s8 }
   0x5   : > { %s44_s14 = ssub.s32 %s410_s9, %s450_s12  ;;  %p57_p0 = scmp.ne.s32.totalorder %s406_s8, %s402_s7 }
   0x6   : > { %p45_p1 = scmp.eq.s32.totalorder %s44_s14, 0  ;;  %p58_p2 = scmp.eq.s32.totalorder %s446_s10, 1 }
   0x7   : > { %p63_p3 = scmp.ne.s32.totalorder %s402_s7, %s398_s6  ;;  %p64_p4 = scmp.eq.s32.totalorder %s295_s11, 1 }
   0x8   : > { %s461_s15 = scalar_select %p45_p1, %s406_s8, %s47_s13  }
   0x9   : > { %p463_p5 = por %p58_p2, %p57_p0  ;;  %p467_p6 = por %p64_p4, %p63_p3 }
   0xa   : > { %p298_p7 = scmp.ge.s32.totalorder %s410_s9, 1  ;;  %p90_p8 = scmp.lt.s32.totalorder %s410_s9, 3 }
   0xc   : > { %p91_p9 = pnand %p298_p7, %p90_p8 }
   0xd   : > { %p110_p10 = scmp.lt.s32.totalorder (!%p91_p9), %s446_s10, 1  ;;  %s107_s23 = sand.u32 (!%p91_p9), 1, %s402_s7  }
   0xe   : > { %94 = sbr.rel (%p91_p9) target bundleno = 176 (0xb0), region = 24  ;;  %s299_s24 = sshll.u32 (!%p91_p9), %s107_s23, 6 }
   0xf   : > { %s109_s25 = scalar_lea.vmem (!%p91_p9), [#allocation2], %s299_s24  ;;  %s308_s27 = sshll.u32 (!%p91_p9), %s446_s10, 10 }
  0x10   : > { %s233_s26 = sshll.u32 (!%p91_p9), %s109_s25, 4  ;;  %s519_s30 = scalar_lea.hbm (!%p91_p9), %s562_s1, %s308_s27  ;;  %s514_s26 = int_to_ptr.vmem [resolvable:$true] %s233_s26 }
  0x11   : > { %s521_s2 = scalar_lea.sflag (!%p91_p9), [#allocation3], %s107_s23  ;;  %s350_s3 = scalar_lea.vmem (!%p91_p9), %s514_s26, 1024 }
  0x12   : > { %p351_p11 = scmp.ne.s32.totalorder (!%p91_p9), %s514_s26, %s350_s3  ;;  %s412_s4 = smov (!%p91_p9), [#allocation2]  }
  0x13   : > { %s111_s18 = scalar_select %p110_p10, %s446_s10, 1 }
  0x14   : > { %p352_p12 = pnand %p351_p11, %p463_p5  ;;  %s354_s5 = sshll.u32 %s412_s4, 4  ;;  %s355_s5 = int_to_ptr.vmem [resolvable:$false] %s354_s5 }
  0x15   : > { %s307_s19 = sshll.u32 %s111_s18, 8  ;;  %s356_s10 = scalar_lea.vmem %s355_s5, 2048 }
  0x16   : > { %s478_s22 = scalar_lea.vmem %s561_s0, %s307_s19  ;;  %p353_p13 = pneg %p352_p12 }
  0x17   : > { %v131_v0 = vld [vmem:[%s478_s22 + $0x80] sm:$0xff]  ;;  %v132_v2 = vld [vmem:[%s478_s22 + $0x88] sm:$0xff]  ;;  %v133_v4 = vld [vmem:[%s478_s22 + $0x90] sm:$0xff]  ;;  %p357_p0 = scmp.lt.s32.totalorder %s514_s26, %s355_s5  ;;  %p358_p1 = scmp.lt.s32.totalorder %s356_s10, %s350_s3 }
  0x18   : > { %v115_v1 = vld [vmem:[%s478_s22] sm:$0xff]  ;;  %179 = vxpose.xlu1.b32.start [1/16] (narrow) %v131_v0, 32  ;;  %v116_v3 = vld [vmem:[%s478_s22 + $0x8] sm:$0xff]  ;;  %v117_v5 = vld [vmem:[%s478_s22 + $0x10] sm:$0xff] }
  0x19   : > { %147 = vxpose.xlu0.b32.start [1/16] (narrow) %v115_v1, 32  ;;  %v134_v6 = vld [vmem:[%s478_s22 + $0x98] sm:$0xff]  ;;  %v135_v8 = vld [vmem:[%s478_s22 + $0xa0] sm:$0xff]  ;;  %v136_v10 = vld [vmem:[%s478_s22 + $0xa8] sm:$0xff]  ;;  %p359_p2 = por %p358_p1, %p357_p0 }
  0x1a   : > { %v118_v7 = vld [vmem:[%s478_s22 + $0x18] sm:$0xff]  ;;  %v119_v9 = vld [vmem:[%s478_s22 + $0x20] sm:$0xff]  ;;  %v120_v11 = vld [vmem:[%s478_s22 + $0x28] sm:$0xff] }
  0x1b   : > { %v137_v12 = vld [vmem:[%s478_s22 + $0xb0] sm:$0xff]  ;;  %v138_v14 = vld [vmem:[%s478_s22 + $0xb8] sm:$0xff]  ;;  %v139_v16 = vld [vmem:[%s478_s22 + $0xc0] sm:$0xff]  ;;  %p360_p3 = pnand %p359_p2, %p353_p13 }
  0x1c   : > { %180 = vxpose.xlu1.b32.cont [2/16] (narrow) %v132_v2, 32  ;;  %v121_v13 = vld [vmem:[%s478_s22 + $0x30] sm:$0xff]  ;;  %v122_v15 = vld [vmem:[%s478_s22 + $0x38] sm:$0xff]  ;;  %v123_v17 = vld [vmem:[%s478_s22 + $0x40] sm:$0xff] }
  0x1d   : > { %148 = vxpose.xlu0.b32.cont [2/16] (narrow) %v116_v3, 32  ;;  %v140_v18 = vld [vmem:[%s478_s22 + $0xc8] sm:$0xff]  ;;  %v141_v20 = vld [vmem:[%s478_s22 + $0xd0] sm:$0xff]  ;;  %v142_v22 = vld [vmem:[%s478_s22 + $0xd8] sm:$0xff] }
  0x1e   : > { %v124_v19 = vld [vmem:[%s478_s22 + $0x48] sm:$0xff]  ;;  %v125_v21 = vld [vmem:[%s478_s22 + $0x50] sm:$0xff]  ;;  %v126_v23 = vld [vmem:[%s478_s22 + $0x58] sm:$0xff] }
  0x1f   : > { %v143_v24 = vld [vmem:[%s478_s22 + $0xe0] sm:$0xff]  ;;  %v144_v26 = vld [vmem:[%s478_s22 + $0xe8] sm:$0xff]  ;;  %v145_v28 = vld [vmem:[%s478_s22 + $0xf0] sm:$0xff] }
  0x20   : > { %181 = vxpose.xlu1.b32.cont [3/16] (narrow) %v133_v4, 32  ;;  %v127_v25 = vld [vmem:[%s478_s22 + $0x60] sm:$0xff]  ;;  %v128_v27 = vld [vmem:[%s478_s22 + $0x68] sm:$0xff]  ;;  %v129_v29 = vld [vmem:[%s478_s22 + $0x70] sm:$0xff] }
  0x21   : > { %149 = vxpose.xlu0.b32.cont [3/16] (narrow) %v117_v5, 32  ;;  %v146_v30 = vld [vmem:[%s478_s22 + $0xf8] sm:$0xff] }
  0x22   : > { %v130_v31 = vld [vmem:[%s478_s22 + $0x78] sm:$0xff] }
  0x24   : > { %182 = vxpose.xlu1.b32.cont [4/16] (narrow) %v134_v6, 32 }
  0x25   : > { %150 = vxpose.xlu0.b32.cont [4/16] (narrow) %v118_v7, 32 }
  0x28   : > { %183 = vxpose.xlu1.b32.cont [5/16] (narrow) %v135_v8, 32 }
  0x29   : > { %151 = vxpose.xlu0.b32.cont [5/16] (narrow) %v119_v9, 32 }
  0x2c   : > { %184 = vxpose.xlu1.b32.cont [6/16] (narrow) %v136_v10, 32 }
  0x2d   : > { %152 = vxpose.xlu0.b32.cont [6/16] (narrow) %v120_v11, 32 }
  0x30   : > { %185 = vxpose.xlu1.b32.cont [7/16] (narrow) %v137_v12, 32 }
  0x31   : > { %153 = vxpose.xlu0.b32.cont [7/16] (narrow) %v121_v13, 32 }
  0x34   : > { %186 = vxpose.xlu1.b32.cont [8/16] (narrow) %v138_v14, 32 }
  0x35   : > { %154 = vxpose.xlu0.b32.cont [8/16] (narrow) %v122_v15, 32 }
  0x38   : > { %187 = vxpose.xlu1.b32.cont [9/16] (narrow) %v139_v16, 32 }
  0x39   : > { %155 = vxpose.xlu0.b32.cont [9/16] (narrow) %v123_v17, 32 }
  0x3c   : > { %188 = vxpose.xlu1.b32.cont [10/16] (narrow) %v140_v18, 32 }
  0x3d   : > { %156 = vxpose.xlu0.b32.cont [10/16] (narrow) %v124_v19, 32 }
  0x40   : > { %189 = vxpose.xlu1.b32.cont [11/16] (narrow) %v141_v20, 32 }
  0x41   : > { %157 = vxpose.xlu0.b32.cont [11/16] (narrow) %v125_v21, 32 }
  0x44   : > { %190 = vxpose.xlu1.b32.cont [12/16] (narrow) %v142_v22, 32 }
  0x45   : > { %158 = vxpose.xlu0.b32.cont [12/16] (narrow) %v126_v23, 32 }
  0x48   : > { %191 = vxpose.xlu1.b32.cont [13/16] (narrow) %v143_v24, 32 }
  0x49   : > { %159 = vxpose.xlu0.b32.cont [13/16] (narrow) %v127_v25, 32 }
  0x4c   : > { %192 = vxpose.xlu1.b32.cont [14/16] (narrow) %v144_v26, 32 }
  0x4d   : > { %160 = vxpose.xlu0.b32.cont [14/16] (narrow) %v128_v27, 32 }
  0x50   : > { %193 = vxpose.xlu1.b32.cont [15/16] (narrow) %v145_v28, 32 }
  0x51   : > { %161 = vxpose.xlu0.b32.cont [15/16] (narrow) %v129_v29, 32 }
  0x54   : > { %194 = vxpose.xlu1.b32.end [16/16] (narrow) %v146_v30, 32 }
  0x55   : > { %162 = vxpose.xlu0.b32.end [16/16] (narrow) %v130_v31, 32 }
  0x94   : > { %v195_v32 = vpop.trf.xlu1 }
  0x95   : > { %v163_v33 = vpop.trf.xlu0  ;;  %212 = vst [vmem:[%s109_s25 + $0x8] sm:$0xff] %v195_v32 }
  0x96   : > { %211 = vst [vmem:[%s109_s25] sm:$0xff] %v163_v33 }
  0x98   : > { %v196_v34 = vpop.trf.xlu1 }
  0x99   : > { %v164_v35 = vpop.trf.xlu0  ;;  %214 = vst [vmem:[%s109_s25 + $0x18] sm:$0xff] %v196_v34 }
  0x9a   : > { %213 = vst [vmem:[%s109_s25 + $0x10] sm:$0xff] %v164_v35 }
  0x9c   : > { %v197_v36 = vpop.trf.xlu1 }
  0x9d   : > { %v165_v37 = vpop.trf.xlu0  ;;  %216 = vst [vmem:[%s109_s25 + $0x28] sm:$0xff] %v197_v36 }
  0x9e   : > { %215 = vst [vmem:[%s109_s25 + $0x20] sm:$0xff] %v165_v37 }
  0xa0   : > { %v198_v38 = vpop.trf.xlu1 }
  0xa1   : > { %v166_v39 = vpop.trf.xlu0  ;;  %218 = vst [vmem:[%s109_s25 + $0x38] sm:$0xff] %v198_v38 }
  0xa2   : > { %217 = vst [vmem:[%s109_s25 + $0x30] sm:$0xff] %v166_v39 }
  0xa3   : > { %363 = shalt.err (!%p360_p3)
}
  0xa4   : > { %s364_s11 = scalar_lea.hbm %s519_s30, 1024  ;;  %s368_s18 = scalar_lea.hbm %s562_s1, 2048 }
  0xa5   : > { %p365_p4 = scmp.ne.s32.totalorder %s519_s30, %s364_s11  ;;  %p369_p9 = scmp.lt.s32.totalorder %s519_s30, %s562_s1 }
  0xa6   : > { %p370_p10 = scmp.lt.s32.totalorder %s368_s18, %s364_s11 }
  0xa7   : > { %p366_p7 = pnand %p365_p4, %p463_p5 }
  0xa8   : > { %p371_p11 = por %p370_p10, %p369_p9 }
  0xa9   : > { %p367_p8 = pneg %p366_p7 }
  0xab   : > { %p372_p12 = pnand %p371_p11, %p367_p8 }
  0xad   : > { %375 = shalt.err (!%p372_p12)
}
  0xae   : > { %s413_s21 = smov 256   ;;  %s414_s22 = smov 16  }
  0xaf   : > { %309 = dma.vmem_to_hbm [thread:$0]  (%p463_p5), %s514_s26, 1024, %s519_s30, %s521_s2, %s413_s21, %s413_s21, %s414_s22  }
  0xb0 PF: > { %p315_p13 = scmp.ge.s32.totalorder %s410_s9, 2  ;;  %s248_s23 = sand.u32 1, %s398_s6  }
  0xb1   : > { %s249_s24 = scalar_lea.sflag [#allocation3], %s248_s23 }
  0xb2   : > { %p312_p0 = pnand %p315_p13, %p467_p6 }
  0xb4   : > { %p313_p1 = pneg %p312_p0 }
  0xb6   : > { %393 = dma.done.wait (%p313_p1), %s249_s24, 1024  }
  0xb7   : > { %395 = vsyncadd (%p313_p1), %s249_s24, 4294966272  ;;  %p11_p2 = scmp.ge.s32.totalorder %s450_s12, 4   ;;  %s565_s6 = smov %s402_s7 }
  0xb8   : > { %s566_s7 = smov %s406_s8  ;;  %s567_s8 = smov %s461_s15 }
  0xb9   : > { %s568_s9 = smov %s450_s12  ;;  %13 = sbr.rel (!%p11_p2) target bundleno = 3 (0x3), region = 59 }
  0xbe   :  { %254 = vsyncpa [#allocation3], 1 }
  0xbf   :  { %256 = vsyncpa [#allocation3 + $0x1], 1 }

</bundles_post_ra>
